<compile_context>
chip_gen: v7x
topology: tpu7x:2x2x1
jax: 0.10.0
libtpu: 0.0.40
codegen_flags: <defaults>
</compile_context>

<pallas_src>
import functools

import jax
import jax.numpy as jnp
from jax.experimental import pallas as pl
from jax.experimental.pallas import tpu as pltpu

LANE = 128
SUBLANE = 8
MAX_TILE_S = 512           # decoder rows per tile; well within VMEM on v5e/v6e/v7x


def _ceil_to(n, m):
    return ((n + m - 1) // m) * m


def _pad_axis(x, axis, target):
    pad = target - x.shape[axis]
    if pad == 0:
        return x
    cfg = [(0, 0)] * x.ndim
    cfg[axis] = (0, pad)
    return jnp.pad(x, cfg)


def _pad_2d(w, rows, cols):
    if w.shape == (rows, cols):
        return w
    return jnp.pad(w, ((0, rows - w.shape[0]), (0, cols - w.shape[1])))


# ------------------------------ fused kernel ------------------------------- #

def fused_encdec_kernel(xl_ref, yd_ref, we_ref, be_ref,
                        w1x_ref, w1s_ref, b1_ref, w2_ref, b2_ref,
                        out_ref, ctx_ref):
    """Fused encoder -> init_state -> decoder over one (batch, seq-tile).

    grid = (B, S_pad // TILE_S)
      xl_ref  : (B, Dip) f32, VMEM-resident (last encoder time step per batch)
      yd_ref  : (TILE_S, Ddp) bf16 tile of dec_X (batch dim squeezed)
      weights : bf16, biases f32, all lane-padded, VMEM-resident
      out_ref : (TILE_S, Op) f32 tile
      ctx_ref : (1, Hp) f32 scratch -- per-batch decoder context bias
    """
    b = pl.program_id(0)

    # Per-batch encoder + seq-invariant decoder context, computed once per batch.
    @pl.when(pl.program_id(1) == 0)
    def _():
        x_last = xl_ref[pl.ds(b, 1), :].astype(we_ref.dtype)          # (1, Dip)
        h_enc = jnp.maximum(
            jnp.dot(x_last, we_ref[...], preferred_element_type=jnp.float32)
            + be_ref[...], 0.0)                                        # (1, Hp)
        ctx_ref[...] = (
            jnp.dot(h_enc.astype(w1s_ref.dtype), w1s_ref[...],
                    preferred_element_type=jnp.float32)
            + b1_ref[...])                                             # (1, Hp)

    # Decoder hidden layer for this seq tile (sublane-broadcast of ctx bias).
    hx = jnp.dot(yd_ref[...], w1x_ref[...],
                 preferred_element_type=jnp.float32)                   # (TILE_S, Hp)
    h = jnp.maximum(hx + ctx_ref[...], 0.0)

    # Decoder output projection (lane-dense store).
    out = jnp.dot(h.astype(w2_ref.dtype), w2_ref[...],
                  preferred_element_type=jnp.float32) + b2_ref[...]
    out_ref[...] = out.astype(out_ref.dtype)


# ------------------------- one-time parameter prep ------------------------- #

def prepare_params(params):
    """Pad weights to 128-lane multiples and cast streamed weights to bf16.

    Done once, outside the per-call forward, so no per-forward jnp.pad copies.
    """
    D_in, H = params["W_enc"].shape
    D_dec = params["W1x"].shape[0]
    O = params["W2"].shape[1]

    Dip = _ceil_to(D_in, LANE)
    Ddp = _ceil_to(D_dec, LANE)
    Hp = _ceil_to(H, LANE)
    Op = _ceil_to(O, LANE)

    prepared = {
        "W_enc": _pad_2d(params["W_enc"], Dip, Hp).astype(jnp.bfloat16),
        "b_enc": _pad_axis(params["b_enc"], 1, Hp).astype(jnp.float32),
        "W1x":   _pad_2d(params["W1x"], Ddp, Hp).astype(jnp.bfloat16),
        "W1s":   _pad_2d(params["W1s"], Hp, Hp).astype(jnp.bfloat16),
        "b1":    _pad_axis(params["b1"], 1, Hp).astype(jnp.float32),
        "W2":    _pad_2d(params["W2"], Hp, Op).astype(jnp.bfloat16),
        "b2":    _pad_axis(params["b2"], 1, Op).astype(jnp.float32),
    }
    return prepared, O


# -------------------------------- wrapper ---------------------------------- #

def encoder_decoder_forward(prepared, enc_X, dec_X, *, out_dim):
    """Mirrors EncoderDeconder.forward for the concrete MLP encoder/decoder."""
    B, _, D_in = enc_X.shape
    _, S_dec, D_dec = dec_X.shape

    Dip = prepared["W_enc"].shape[0]
    Ddp = prepared["W1x"].shape[0]
    Hp = prepared["W1s"].shape[0]
    Op = prepared["W2"].shape[1]
    O = out_dim

    # Seq tiling: sublane-aligned, capped so double-buffered tiles fit every
    # generation's scoped VMEM (v5e 16 MiB default .. v7x 64 MiB physical).
    TILE_S = min(_ceil_to(S_dec, SUBLANE), MAX_TILE_S)
    Sp = _ceil_to(S_dec, TILE_S)
    n_s = Sp // TILE_S

    # Activations: pad only what is actually needed, cast streamed dec_X to bf16.
    # init_state only consumes the final encoder time step (see TODO above).
    xl = _pad_axis(enc_X[:, -1, :], 1, Dip).astype(jnp.float32)        # (B, Dip)
    yd = dec_X
    if Sp != S_dec:
        yd = _pad_axis(yd, 1, Sp)
    if Ddp != D_dec:
        yd = _pad_axis(yd, 2, Ddp)
    yd = yd.astype(jnp.bfloat16)                                       # (B, Sp, Ddp)

    const_spec = lambda shape: pl.BlockSpec(shape, lambda b, s: (0, 0))

    in_specs = [
        pl.BlockSpec((B, Dip), lambda b, s: (0, 0)),                   # xl (resident)
        pl.BlockSpec((None, TILE_S, Ddp), lambda b, s: (b, s, 0)),     # dec_X tile
        const_spec(prepared["W_enc"].shape),
        const_spec(prepared["b_enc"].shape),
        const_spec(prepared["W1x"].shape),
        const_spec(prepared["W1s"].shape),
        const_spec(prepared["b1"].shape),
        const_spec(prepared["W2"].shape),
        const_spec(prepared["b2"].shape),
    ]
    out_spec = pl.BlockSpec((None, TILE_S, Op), lambda b, s: (b, s, 0))

    flops = (2 * B * Sp * (Ddp * Hp + Hp * Op)          # decoder matmuls
             + 2 * B * (Dip * Hp + Hp * Hp))            # per-batch encoder/context
    bytes_accessed = (B * Sp * Ddp * 2                  # dec_X stream (bf16)
                      + B * Sp * Op * 4                 # output stream (f32)
                      + B * Dip * 4                     # xl
                      + (Dip * Hp + Ddp * Hp + Hp * Hp + Hp * Op) * 2
                      + (2 * Hp + Op) * 4)              # biases

    out = pl.pallas_call(
        fused_encdec_kernel,
        out_shape=jax.ShapeDtypeStruct((B, Sp, Op), jnp.float32),
        grid=(B, n_s),
        in_specs=in_specs,
        out_specs=out_spec,
        scratch_shapes=[pltpu.VMEM((1, Hp), jnp.float32)],
        compiler_params=pltpu.CompilerParams(
            dimension_semantics=("parallel", "arbitrary"),
            vmem_limit_bytes=32 * 1024 * 1024),
        cost_estimate=pl.CostEstimate(
            flops=flops, transcendentals=0, bytes_accessed=bytes_accessed),
    )(xl, yd,
      prepared["W_enc"], prepared["b_enc"],
      prepared["W1x"], prepared["W1s"], prepared["b1"],
      prepared["W2"], prepared["b2"])

    # Slice off seq/lane padding (fuses into the consumer under jit).
    return out[:, :S_dec, :O]


# pure-JAX f32 reference for correctness check
def reference_forward(params, enc_X, dec_X):
    h_enc = jnp.maximum(
        jnp.einsum("bsd,dh->bsh", enc_X, params["W_enc"]) + params["b_enc"][None], 0.0)
    state = h_enc[:, -1, :]                                            # (B, H)
    h = (jnp.einsum("bsd,dh->bsh", dec_X, params["W1x"])
         + jnp.einsum("bh,ho->bo", state, params["W1s"])[:, None, :]
         + params["b1"][None])
    h = jnp.maximum(h, 0.0)
    return jnp.einsum("bsh,ho->bso", h, params["W2"]) + params["b2"][None]


# --------------------------------- main ------------------------------------ #

if __name__ == "__main__":
    B, S_enc, S_dec = 2, 8, 8
    D_in, D_dec, H, D_out = 16, 16, 32, 16

    key = jax.random.PRNGKey(0)
    ks = jax.random.split(key, 9)

    params = {
        "W_enc": jax.random.normal(ks[0], (D_in, H), jnp.float32) * 0.1,
        "b_enc": jax.random.normal(ks[1], (1, H), jnp.float32) * 0.01,
        "W1x":   jax.random.normal(ks[2], (D_dec, H), jnp.float32) * 0.1,
        "W1s":   jax.random.normal(ks[3], (H, H), jnp.float32) * 0.1,
        "b1":    jax.random.normal(ks[4], (1, H), jnp.float32) * 0.01,
        "W2":    jax.random.normal(ks[5], (H, D_out), jnp.float32) * 0.1,
        "b2":    jax.random.normal(ks[6], (1, D_out), jnp.float32) * 0.01,
    }

    enc_X = jax.random.normal(ks[7], (B, S_enc, D_in), jnp.float32)
    dec_X = jax.random.normal(ks[8], (B, S_dec, D_dec), jnp.float32)

    # One-time parameter prep (padding + bf16 casts) hoisted out of the forward.
    prepared, out_dim = prepare_params(params)
    prepared = jax.tree_util.tree_map(jax.block_until_ready, prepared)

    fwd = jax.jit(functools.partial(encoder_decoder_forward, out_dim=out_dim))
    out = jax.block_until_ready(fwd(prepared, enc_X, dec_X))

    ref = reference_forward(params, enc_X, dec_X)
    assert out.shape == (B, S_dec, D_out), out.shape
    # bf16 streamed operands with f32 accumulation -> loosened tolerance.
    assert jnp.allclose(out, ref, atol=3e-2, rtol=3e-2), (
        "mismatch vs reference, max abs err = %f"
        % float(jnp.max(jnp.abs(out - ref))))

    print("KERNEL_OK")
</pallas_src>

<mosaic_0001>
module attributes {stable_mosaic.version = 11 : i64} {
  func.func @fused_encdec_kernel(%arg0: i32, %arg1: i32, %arg2: memref<2x128xf32, #tpu.memory_space<vmem>>, %arg3: memref<1x8x128xbf16, #tpu.memory_space<vmem>>, %arg4: memref<128x128xbf16, #tpu.memory_space<vmem>>, %arg5: memref<1x128xf32, #tpu.memory_space<vmem>>, %arg6: memref<128x128xbf16, #tpu.memory_space<vmem>>, %arg7: memref<128x128xbf16, #tpu.memory_space<vmem>>, %arg8: memref<1x128xf32, #tpu.memory_space<vmem>>, %arg9: memref<128x128xbf16, #tpu.memory_space<vmem>>, %arg10: memref<1x128xf32, #tpu.memory_space<vmem>>, %arg11: memref<1x8x128xf32, #tpu.memory_space<vmem>>, %arg12: memref<1x128xf32, #tpu.memory_space<vmem>>) attributes {dimension_semantics = [#tpu.dimension_semantics<parallel>, #tpu.dimension_semantics<arbitrary>], iteration_bounds = array<i64: 2, 1>, scalar_prefetch = 0 : i64, scratch_operands = 1 : i64, tpu.core_type = #tpu.core_type<tc>, window_params = [{pipeline_mode = #tpu.pipeline_mode<synchronous>, transform_indices = @transform_0, window_bounds = array<i64: 2, 128>}, {transform_indices = @transform_1, window_bounds = array<i64: 1, 8, 128>}, {pipeline_mode = #tpu.pipeline_mode<synchronous>, transform_indices = @transform_2, window_bounds = array<i64: 128, 128>}, {pipeline_mode = #tpu.pipeline_mode<synchronous>, transform_indices = @transform_3, window_bounds = array<i64: 1, 128>}, {pipeline_mode = #tpu.pipeline_mode<synchronous>, transform_indices = @transform_4, window_bounds = array<i64: 128, 128>}, {pipeline_mode = #tpu.pipeline_mode<synchronous>, transform_indices = @transform_5, window_bounds = array<i64: 128, 128>}, {pipeline_mode = #tpu.pipeline_mode<synchronous>, transform_indices = @transform_6, window_bounds = array<i64: 1, 128>}, {pipeline_mode = #tpu.pipeline_mode<synchronous>, transform_indices = @transform_7, window_bounds = array<i64: 128, 128>}, {pipeline_mode = #tpu.pipeline_mode<synchronous>, transform_indices = @transform_8, window_bounds = array<i64: 1, 128>}, {transform_indices = @transform_9, window_bounds = array<i64: 1, 8, 128>}]} {
    %c0_i32 = arith.constant 0 : i32
    %0 = arith.cmpi eq, %arg1, %c0_i32 : i32
    %1 = arith.extui %0 : i1 to i32
    %c0_i32_0 = arith.constant 0 : i32
    %2 = arith.cmpi ne, %1, %c0_i32_0 : i32
    scf.if %2 {
      %21 = arith.index_cast %arg0 : i32 to index
      %c0_16 = arith.constant 0 : index
      %22 = vector.load %arg2[%21, %c0_16] : memref<2x128xf32, #tpu.memory_space<vmem>>, vector<1x128xf32>
      %23 = arith.truncf %22 : vector<1x128xf32> to vector<1x128xbf16>
      %c0_17 = arith.constant 0 : index
      %c0_18 = arith.constant 0 : index
      %24 = vector.load %arg4[%c0_17, %c0_18] : memref<128x128xbf16, #tpu.memory_space<vmem>>, vector<128x128xbf16>
      %cst_19 = arith.constant dense<0.000000e+00> : vector<1x128xf32>
      %25 = tpu.matmul %23, %24, %cst_19 {dimension_numbers = #tpu.dot_dimension_numbers<[1], [0], [0], [1], [0, 0, 1, 1], [], []>} : vector<1x128xbf16>, vector<128x128xbf16>, vector<1x128xf32> -> vector<1x128xf32>
      %c0_20 = arith.constant 0 : index
      %c0_21 = arith.constant 0 : index
      %26 = vector.load %arg5[%c0_20, %c0_21] : memref<1x128xf32, #tpu.memory_space<vmem>>, vector<1x128xf32>
      %27 = arith.addf %25, %26 : vector<1x128xf32>
      %cst_22 = arith.constant 0.000000e+00 : f32
      %28 = vector.broadcast %cst_22 : f32 to vector<1x128xf32>
      %29 = arith.maximumf %27, %28 : vector<1x128xf32>
      %30 = arith.truncf %29 : vector<1x128xf32> to vector<1x128xbf16>
      %c0_23 = arith.constant 0 : index
      %c0_24 = arith.constant 0 : index
      %31 = vector.load %arg7[%c0_23, %c0_24] : memref<128x128xbf16, #tpu.memory_space<vmem>>, vector<128x128xbf16>
      %cst_25 = arith.constant dense<0.000000e+00> : vector<1x128xf32>
      %32 = tpu.matmul %30, %31, %cst_25 {dimension_numbers = #tpu.dot_dimension_numbers<[1], [0], [0], [1], [0, 0, 1, 1], [], []>} : vector<1x128xbf16>, vector<128x128xbf16>, vector<1x128xf32> -> vector<1x128xf32>
      %c0_26 = arith.constant 0 : index
      %c0_27 = arith.constant 0 : index
      %33 = vector.load %arg8[%c0_26, %c0_27] : memref<1x128xf32, #tpu.memory_space<vmem>>, vector<1x128xf32>
      %34 = arith.addf %32, %33 : vector<1x128xf32>
      %c0_28 = arith.constant 0 : index
      %c0_29 = arith.constant 0 : index
      %35 = vector.load %arg12[%c0_28, %c0_29] : memref<1x128xf32, #tpu.memory_space<vmem>>, vector<1x128xf32>
      tpu.vector_store %arg12[%c0_28, %c0_29], %34 {strides = array<i32>} : memref<1x128xf32, #tpu.memory_space<vmem>>, vector<1x128xf32>,
    } else {
    }
    %c0 = arith.constant 0 : index
    %c0_1 = arith.constant 0 : index
    %c0_2 = arith.constant 0 : index
    %3 = vector.load %arg3[%c0, %c0_1, %c0_2] : memref<1x8x128xbf16, #tpu.memory_space<vmem>>, vector<1x8x128xbf16>
    %4 = vector.shape_cast %3 : vector<1x8x128xbf16> to vector<8x128xbf16>
    %c0_3 = arith.constant 0 : index
    %c0_4 = arith.constant 0 : index
    %5 = vector.load %arg6[%c0_3, %c0_4] : memref<128x128xbf16, #tpu.memory_space<vmem>>, vector<128x128xbf16>
    %cst = arith.constant dense<0.000000e+00> : vector<8x128xf32>
    %6 = tpu.matmul %4, %5, %cst {dimension_numbers = #tpu.dot_dimension_numbers<[1], [0], [0], [1], [0, 0, 1, 1], [], []>} : vector<8x128xbf16>, vector<128x128xbf16>, vector<8x128xf32> -> vector<8x128xf32>
    %c0_5 = arith.constant 0 : index
    %c0_6 = arith.constant 0 : index
    %7 = vector.load %arg12[%c0_5, %c0_6] : memref<1x128xf32, #tpu.memory_space<vmem>>, vector<1x128xf32>
    %8 = vector.broadcast %7 : vector<1x128xf32> to vector<8x128xf32>
    %9 = arith.addf %6, %8 : vector<8x128xf32>
    %cst_7 = arith.constant 0.000000e+00 : f32
    %10 = vector.broadcast %cst_7 : f32 to vector<8x128xf32>
    %11 = arith.maximumf %9, %10 : vector<8x128xf32>
    %12 = arith.truncf %11 : vector<8x128xf32> to vector<8x128xbf16>
    %c0_8 = arith.constant 0 : index
    %c0_9 = arith.constant 0 : index
    %13 = vector.load %arg9[%c0_8, %c0_9] : memref<128x128xbf16, #tpu.memory_space<vmem>>, vector<128x128xbf16>
    %cst_10 = arith.constant dense<0.000000e+00> : vector<8x128xf32>
    %14 = tpu.matmul %12, %13, %cst_10 {dimension_numbers = #tpu.dot_dimension_numbers<[1], [0], [0], [1], [0, 0, 1, 1], [], []>} : vector<8x128xbf16>, vector<128x128xbf16>, vector<8x128xf32> -> vector<8x128xf32>
    %c0_11 = arith.constant 0 : index
    %c0_12 = arith.constant 0 : index
    %15 = vector.load %arg10[%c0_11, %c0_12] : memref<1x128xf32, #tpu.memory_space<vmem>>, vector<1x128xf32>
    %16 = vector.broadcast %15 : vector<1x128xf32> to vector<8x128xf32>
    %17 = arith.addf %14, %16 : vector<8x128xf32>
    %c0_13 = arith.constant 0 : index
    %c0_14 = arith.constant 0 : index
    %c0_15 = arith.constant 0 : index
    %18 = vector.load %arg11[%c0_13, %c0_14, %c0_15] : memref<1x8x128xf32, #tpu.memory_space<vmem>>, vector<1x8x128xf32>
    %19 = vector.shape_cast %18 : vector<1x8x128xf32> to vector<8x128xf32>
    %20 = vector.shape_cast %17 : vector<8x128xf32> to vector<1x8x128xf32>
    tpu.vector_store %arg11[%c0_13, %c0_14, %c0_15], %20 {strides = array<i32>} : memref<1x8x128xf32, #tpu.memory_space<vmem>>, vector<1x8x128xf32>,
    return
  }
  func.func @transform_0(%arg0: i32, %arg1: i32) -> (i32, i32) {
    %c0_i32 = arith.constant 0 : i32
    %c0_i32_0 = arith.constant 0 : i32
    %c0_i32_1 = arith.constant 0 : i32
    return %c0_i32, %c0_i32_0 : i32, i32
  }
  func.func @transform_1(%arg0: i32, %arg1: i32) -> (i32, i32, i32) {
    %c0_i32 = arith.constant 0 : i32
    %c0_i32_0 = arith.constant 0 : i32
    return %arg0, %arg1, %c0_i32 : i32, i32, i32
  }
  func.func @transform_2(%arg0: i32, %arg1: i32) -> (i32, i32) {
    %c0_i32 = arith.constant 0 : i32
    %c0_i32_0 = arith.constant 0 : i32
    %c0_i32_1 = arith.constant 0 : i32
    return %c0_i32, %c0_i32_0 : i32, i32
  }
  func.func @transform_3(%arg0: i32, %arg1: i32) -> (i32, i32) {
    %c0_i32 = arith.constant 0 : i32
    %c0_i32_0 = arith.constant 0 : i32
    %c0_i32_1 = arith.constant 0 : i32
    return %c0_i32, %c0_i32_0 : i32, i32
  }
  func.func @transform_4(%arg0: i32, %arg1: i32) -> (i32, i32) {
    %c0_i32 = arith.constant 0 : i32
    %c0_i32_0 = arith.constant 0 : i32
    %c0_i32_1 = arith.constant 0 : i32
    return %c0_i32, %c0_i32_0 : i32, i32
  }
  func.func @transform_5(%arg0: i32, %arg1: i32) -> (i32, i32) {
    %c0_i32 = arith.constant 0 : i32
    %c0_i32_0 = arith.constant 0 : i32
    %c0_i32_1 = arith.constant 0 : i32
    return %c0_i32, %c0_i32_0 : i32, i32
  }
  func.func @transform_6(%arg0: i32, %arg1: i32) -> (i32, i32) {
    %c0_i32 = arith.constant 0 : i32
    %c0_i32_0 = arith.constant 0 : i32
    %c0_i32_1 = arith.constant 0 : i32
    return %c0_i32, %c0_i32_0 : i32, i32
  }
  func.func @transform_7(%arg0: i32, %arg1: i32) -> (i32, i32) {
    %c0_i32 = arith.constant 0 : i32
    %c0_i32_0 = arith.constant 0 : i32
    %c0_i32_1 = arith.constant 0 : i32
    return %c0_i32, %c0_i32_0 : i32, i32
  }
  func.func @transform_8(%arg0: i32, %arg1: i32) -> (i32, i32) {
    %c0_i32 = arith.constant 0 : i32
    %c0_i32_0 = arith.constant 0 : i32
    %c0_i32_1 = arith.constant 0 : i32
    return %c0_i32, %c0_i32_0 : i32, i32
  }
  func.func @transform_9(%arg0: i32, %arg1: i32) -> (i32, i32, i32) {
    %c0_i32 = arith.constant 0 : i32
    %c0_i32_0 = arith.constant 0 : i32
    return %arg0, %arg1, %c0_i32 : i32, i32, i32
  }
}

</mosaic_0001>

<bundles_post_ra>
// kernel: encoder_decoder_forward.1
= control target key start
LH: loop header
LB: loop body
LE: loop exit
PB: predicated region body
PF: predicated region fallthrough
CT: control target
= control target key end

     0   :  { %s2024_s0 = inlined_call_operand.vmem [shape: f32[2,128], index: 0, kind: input, shape index: {}]   ;;  %s2025_s1 = inlined_call_operand.vmem [shape: bf16[2,8,128], index: 1, kind: input, shape index: {}]   ;;  %s2026_s2 = inlined_call_operand.vmem [shape: bf16[128,128], index: 2, kind: input, shape index: {}]   ;;  %s2027_s3 = inlined_call_operand.hbm [shape: f32[1,128], index: 3, kind: input, shape index: {}]   ;;  %s2028_s4 = inlined_call_operand.hbm [shape: bf16[128,128], index: 4, kind: input, shape index: {}]   ;;  %s2029_s5 = inlined_call_operand.hbm [shape: bf16[128,128], index: 5, kind: input, shape index: {}]   ;;  %s2030_s6 = inlined_call_operand.hbm [shape: f32[1,128], index: 6, kind: input, shape index: {}]   ;;  %s2031_s7 = inlined_call_operand.hbm [shape: bf16[128,128], index: 7, kind: input, shape index: {}]   ;;  %s2032_s8 = inlined_call_operand.hbm [shape: f32[1,128], index: 8, kind: input, shape index: {}]   ;;  %s2033_s9 = inlined_call_operand.hbm [shape: f32[2,8,128], index: 9, kind: output, shape index: {}]  }
   0x1   :  { %2047 = sst [smem:[#allocation26_spill]] %s2027_s3 }
   0x2   :  { %2048 = sst [smem:[#allocation27_spill]] %s2028_s4 }
   0x3   :  { %14 = vsyncpa [#allocation4], 0 }
   0x4   :  { %15 = vsyncpa [#allocation7], 0 }
   0x5   :  { %16 = vsyncpa [#allocation10], 0 }
   0x6   :  { %17 = vsyncpa [#allocation13], 0 }
   0x7   :  { %18 = vsyncpa [#allocation5], 0 }
   0x8   :  { %20 = vsyncpa [#allocation5 + $0x1], 0  ;;  %s1679_s30 = smov 0   ;;  %s1681_s10 = smov 0  }
   0x9   :  { %s1683_s11 = smov 0   ;;  %s1685_s12 = smov 0  }
   0xa   :  { %s1687_s13 = smov 0   ;;  %s1689_s14 = smov 0  }
   0xb LB: > { %2049 = sst [smem:[#allocation20_spill]] %s1596_s30  ;;  %s1029_s15 = sadd.s32 4294967295, %s1616_s14   ;;  %s1616_s14 = sphi %s1689_s14, %s26_s14   ;;  %s1612_s13 = sphi %s1687_s13, %s2074_s13   ;;  %s1608_s12 = sphi %s1685_s12, %s2073_s12   ;;  %s1604_s11 = sphi %s1683_s11, %s2072_s11   ;;  %s1600_s10 = sphi %s1681_s10, %s2076_s10   ;;  %s1596_s30 = sphi %s1679_s30, %s2075_s30  }
   0xc   : > { %2050 = sst [smem:[#allocation21_spill]] %s1604_s11  ;;  %s1030_s16 = sadd.s32 4294967294, %s1616_s14  }
   0xd   : > { %2051 = sst [smem:[#allocation22_spill]] %s1612_s13  ;;  %s38_s17 = sadd.s32 1, %s1612_s13 }
   0xe   : > { %s243_s18 = sadd.s32 1, %s1604_s11  ;;  %p40_p0 = scmp.ge.s32.totalorder %s38_s17, 2 }
   0xf   : > { %p253_p1 = scmp.ne.s32.totalorder %s1604_s11, %s1600_s10  ;;  %p254_p2 = scmp.eq.s32.totalorder %s1029_s15, 1 }
  0x10   : > { %p259_p3 = scmp.ne.s32.totalorder %s1600_s10, %s1596_s30  ;;  %s2078_s17 = smov (%p40_p0, %s38_s17), 0 }
  0x11   : > { %2052 = sst [smem:[#allocation23_spill]] %s2078_s17  ;;  %p1719_p4 = por %p254_p2, %p253_p1 }
  0x12   : > { %p260_p5 = scmp.eq.s32.totalorder %s1030_s16, 1  ;;  %s238_s20 = ssub.s32 %s1612_s13, %s2078_s17 }
  0x13   : > { %s2053_s19 = scalar_select %p1719_p4, 1, 0 }
  0x14   : > { %p1031_p6 = scmp.ge.s32.totalorder %s1616_s14, 1  ;;  %p241_p7 = scmp.eq.s32.totalorder %s238_s20, 0 }
  0x15   : > { %p1726_p8 = por %p260_p5, %p259_p3  ;;  %p267_p9 = scmp.lt.s32.totalorder %s1616_s14, 3 }
  0x16   : > { %s1732_s22 = scalar_select %p241_p7, %s1604_s11, %s243_s18  }
  0x17   : > { %s2054_s21 = scalar_select %p1726_p8, 1, 0 }
  0x18   : > { %2056 = sst [smem:[#allocation25_spill]] %s1732_s22  ;;  %p1734_p10 = pnand %p1031_p6, %p267_p9 }
  0x19   : > { %2055 = sst [smem:[#allocation24_spill]] %s2054_s21  ;;  %p1738_p11 = scmp.eq.s32.totalorder %s1029_s15, 0 }
  0x1a   : > { %s2057_s23 = scalar_select %p1734_p10, 1, 0 }
  0x1b   : > { %s2058_s24 = scalar_select %p1738_p11, 1, 0 }
  0x1c   : > { %p1228_p12 = pneg %p1734_p10  ;;  %s1618_s25 = smov [#allocation6]  }
  0x1d   : > { %s296_s26 = sshll.u32 %s1618_s25, 4  ;;  %s1619_s28 = smov [#allocation9]   ;;  %s297_s26 = int_to_ptr.vmem [resolvable:$true] %s296_s26 }
  0x1e   : > { %p1746_p13 = pnand %p1738_p11, %p1228_p12  ;;  %s323_s29 = sshll.u32 %s1619_s28, 4  ;;  %s1750_s29 = int_to_ptr.vmem [resolvable:$true] %s323_s29 }
  0x1f   : > { %s2060_s4 = sld [smem:[#allocation27_spill]] }
  0x20   : > { %p1760_p1 = pneg %p1746_p13 }
  0x25   : > { %s1354_s18 = scalar_lea.hbm %s2060_s4, 1024 }
  0x26   : > { %p1355_p0 = scmp.ne.s32.totalorder %s2060_s4, %s1354_s18  ;;  %p1361_p5 = scmp.lt.u32.totalorder %s1354_s18, %s2060_s4 }
  0x28   : > { %p1357_p2 = pnand %p1760_p1, %p1355_p0 }
  0x2a   : > { %p1358_p3 = pneg %p1357_p2 }
  0x2c   : > { %p1363_p6 = pnand %p1361_p5, %p1358_p3 }
  0x2e   : > { %1366 = shalt.err (!%p1363_p6)
}
  0x2f   : > { %s1367_s15 = scalar_lea.vmem %s297_s26, 1024  ;;  %p1375_p8 = scmp.lt.s32.totalorder %s297_s26, %s297_s26 }
  0x30   : > { %p1368_p7 = scmp.ne.s32.totalorder %s297_s26, %s1367_s15  ;;  %p1376_p4 = scmp.lt.s32.totalorder %s1367_s15, %s1367_s15 }
  0x32   : > { %p1370_p9 = pnand %p1368_p7, %p1760_p1  ;;  %p1377_p11 = por %p1376_p4, %p1375_p8 }
  0x34   : > { %p1371_p12 = pneg %p1370_p9 }
  0x36   : > { %p1378_p10 = pnand %p1377_p11, %p1371_p12 }
  0x38   : > { %1381 = shalt.err (!%p1378_p10)
}
  0x39   : > { %s2043_s17 = smov 64   ;;  %s2045_s16 = smov 4  }
  0x3a   : > { %1234 = dma.hbm_to_vmem [thread:$0]  (!%p1746_p13), %s2060_s4, 1024, %s297_s26, [#allocation7], %s2043_s17, %s2043_s17, %s2045_s16  }
  0x3b   : > { %s1382_s22 = scalar_lea.hbm %s2030_s6, 16 }
  0x3c   : > { %p1383_p4 = scmp.ne.s32.totalorder %s2030_s6, %s1382_s22  ;;  %p1389_p11 = scmp.lt.u32.totalorder %s1382_s22, %s2030_s6 }
  0x3e   : > { %p1385_p8 = pnand %p1383_p4, %p1760_p1 }
  0x40   : > { %p1386_p10 = pneg %p1385_p8 }
  0x42   : > { %p1391_p0 = pnand %p1389_p11, %p1386_p10 }
  0x44   : > { %1394 = shalt.err (!%p1391_p0)
}
  0x45   : > { %s1395_s26 = scalar_lea.vmem %s1750_s29, 16  ;;  %s1402_s11 = scalar_lea.vmem %s1750_s29, 32 }
  0x46   : > { %p1396_p2 = scmp.ne.s32.totalorder %s1750_s29, %s1395_s26  ;;  %p1403_p6 = scmp.lt.s32.totalorder %s1750_s29, %s1750_s29 }
  0x47   : > { %p1404_p7 = scmp.lt.s32.totalorder %s1402_s11, %s1395_s26 }
  0x48   : > { %p1398_p3 = pnand %p1396_p2, %p1760_p1 }
  0x49   : > { %p1405_p9 = por %p1404_p7, %p1403_p6 }
  0x4a   : > { %p1399_p5 = pneg %p1398_p3 }
  0x4c   : > { %p1406_p12 = pnand %p1405_p9, %p1399_p5 }
  0x4e   : > { %1409 = shalt.err (!%p1406_p12)
}
  0x4f   : > { %1240 = dma.hbm_to_vmem [thread:$0]  (!%p1746_p13), %s2030_s6, 16, %s1750_s29, [#allocation10]  }
  0x50   : > { %s1622_s22 = smov [#allocation3]   ;;  %s1623_s18 = smov [#allocation8]  }
  0x51   : > { %s286_s13 = sshll.u32 %s1622_s22, 4  ;;  %s309_s20 = sshll.u32 %s1623_s18, 4  ;;  %s287_s13 = int_to_ptr.vmem [resolvable:$true] %s286_s13  ;;  %s310_s20 = int_to_ptr.vmem [resolvable:$true] %s309_s20 }
  0x52   : > { %s2062_s3 = sld [smem:[#allocation26_spill]] }
  0x58   : > { %s1410_s26 = scalar_lea.hbm %s2062_s3, 16 }
  0x59   : > { %p1411_p4 = scmp.ne.s32.totalorder %s2062_s3, %s1410_s26  ;;  %p1417_p11 = scmp.lt.u32.totalorder %s1410_s26, %s2062_s3 }
  0x5b   : > { %p1413_p8 = pnand %p1411_p4, %p1760_p1 }
  0x5d   : > { %p1414_p10 = pneg %p1413_p8 }
  0x5f   : > { %p1419_p0 = pnand %p1417_p11, %p1414_p10 }
  0x61   : > { %1422 = shalt.err (!%p1419_p0)
}
  0x62   : > { %s1423_s29 = scalar_lea.vmem %s287_s13, 16  ;;  %s1430_s21 = scalar_lea.vmem %s287_s13, 32 }
  0x63   : > { %p1424_p2 = scmp.ne.s32.totalorder %s287_s13, %s1423_s29  ;;  %p1431_p6 = scmp.lt.s32.totalorder %s287_s13, %s287_s13 }
  0x64   : > { %p1432_p7 = scmp.lt.s32.totalorder %s1430_s21, %s1423_s29 }
  0x65   : > { %p1426_p3 = pnand %p1424_p2, %p1760_p1 }
  0x66   : > { %p1433_p9 = por %p1432_p7, %p1431_p6 }
  0x67   : > { %p1427_p5 = pneg %p1426_p3 }
  0x69   : > { %p1434_p12 = pnand %p1433_p9, %p1427_p5 }
  0x6b   : > { %1437 = shalt.err (!%p1434_p12)
}
  0x6c   : > { %1231 = dma.hbm_to_vmem [thread:$0]  (!%p1746_p13), %s2062_s3, 16, %s287_s13, [#allocation4]  }
  0x6d   : > { %s1438_s28 = scalar_lea.hbm %s2029_s5, 1024 }
  0x6e   : > { %p1439_p4 = scmp.ne.s32.totalorder %s2029_s5, %s1438_s28  ;;  %p1445_p11 = scmp.lt.u32.totalorder %s1438_s28, %s2029_s5 }
  0x70   : > { %p1441_p8 = pnand %p1439_p4, %p1760_p1 }
  0x72   : > { %p1442_p10 = pneg %p1441_p8 }
  0x74   : > { %p1447_p0 = pnand %p1445_p11, %p1442_p10 }
  0x76   : > { %1450 = shalt.err (!%p1447_p0)
}
  0x77   : > { %s1451_s29 = scalar_lea.vmem %s310_s20, 1024  ;;  %p1459_p6 = scmp.lt.s32.totalorder %s310_s20, %s310_s20 }
  0x78   : > { %p1452_p2 = scmp.ne.s32.totalorder %s310_s20, %s1451_s29  ;;  %p1460_p7 = scmp.lt.s32.totalorder %s1451_s29, %s1451_s29 }
  0x7a   : > { %p1454_p3 = pnand %p1452_p2, %p1760_p1  ;;  %p1461_p9 = por %p1460_p7, %p1459_p6 }
  0x7c   : > { %p1455_p5 = pneg %p1454_p3 }
  0x7e   : > { %p1462_p12 = pnand %p1461_p9, %p1455_p5 }
  0x80   : > { %1465 = shalt.err (!%p1462_p12)
}
  0x81   : > { %s2063_s13 = smov 4   ;;  %s2064_s21 = smov 64  }
  0x82   : > { %1237 = dma.hbm_to_vmem [thread:$0]  (!%p1746_p13), %s2029_s5, 1024, %s310_s20, [#allocation7], %s2064_s21, %s2064_s21, %s2063_s13  }
  0x83   : > { %s1624_s16 = smov [#allocation11]   ;;  %s1625_s28 = smov [#allocation12]  }
  0x84   : > { %s333_s18 = sshll.u32 %s1624_s16, 4  ;;  %s347_s15 = sshll.u32 %s1625_s28, 4  ;;  %s334_s18 = int_to_ptr.vmem [resolvable:$true] %s333_s18  ;;  %s348_s15 = int_to_ptr.vmem [resolvable:$true] %s347_s15 }
  0x85   : > { %s1466_s30 = scalar_lea.hbm %s2031_s7, 1024 }
  0x86   : > { %p1467_p4 = scmp.ne.s32.totalorder %s2031_s7, %s1466_s30  ;;  %p1473_p11 = scmp.lt.u32.totalorder %s1466_s30, %s2031_s7 }
  0x88   : > { %p1469_p8 = pnand %p1467_p4, %p1760_p1 }
  0x8a   : > { %p1470_p10 = pneg %p1469_p8 }
  0x8c   : > { %p1475_p0 = pnand %p1473_p11, %p1470_p10 }
  0x8e   : > { %1478 = shalt.err (!%p1475_p0)
}
  0x8f   : > { %s1479_s20 = scalar_lea.vmem %s334_s18, 1024  ;;  %p1487_p6 = scmp.lt.s32.totalorder %s334_s18, %s334_s18 }
  0x90   : > { %p1480_p2 = scmp.ne.s32.totalorder %s334_s18, %s1479_s20  ;;  %p1488_p7 = scmp.lt.s32.totalorder %s1479_s20, %s1479_s20 }
  0x92   : > { %p1482_p3 = pnand %p1480_p2, %p1760_p1  ;;  %p1489_p9 = por %p1488_p7, %p1487_p6 }
  0x94   : > { %p1483_p5 = pneg %p1482_p3 }
  0x96   : > { %p1490_p12 = pnand %p1489_p9, %p1483_p5 }
  0x98   : > { %1493 = shalt.err (!%p1490_p12)
}
  0x99   : > { %1243 = dma.hbm_to_vmem [thread:$0]  (!%p1746_p13), %s2031_s7, 1024, %s334_s18, [#allocation10], %s2064_s21, %s2064_s21, %s2063_s13  }
  0x9a   : > { %s1494_s28 = scalar_lea.hbm %s2032_s8, 16 }
  0x9b   : > { %p1495_p4 = scmp.ne.s32.totalorder %s2032_s8, %s1494_s28  ;;  %p1501_p11 = scmp.lt.u32.totalorder %s1494_s28, %s2032_s8 }
  0x9d   : > { %p1497_p8 = pnand %p1495_p4, %p1760_p1 }
  0x9f   : > { %p1498_p10 = pneg %p1497_p8 }
  0xa1   : > { %p1503_p0 = pnand %p1501_p11, %p1498_p10 }
  0xa3   : > { %1506 = shalt.err (!%p1503_p0)
}
  0xa4   : > { %s1507_s17 = scalar_lea.vmem %s348_s15, 16  ;;  %s1514_s13 = scalar_lea.vmem %s348_s15, 32 }
  0xa5   : > { %p1508_p2 = scmp.ne.s32.totalorder %s348_s15, %s1507_s17  ;;  %p1515_p6 = scmp.lt.s32.totalorder %s348_s15, %s348_s15 }
  0xa6   : > { %p1516_p7 = scmp.lt.s32.totalorder %s1514_s13, %s1507_s17 }
  0xa7   : > { %p1510_p3 = pnand %p1508_p2, %p1760_p1 }
  0xa8   : > { %p1517_p9 = por %p1516_p7, %p1515_p6 }
  0xa9   : > { %p1511_p5 = pneg %p1510_p3 }
  0xab   : > { %p1518_p12 = pnand %p1517_p9, %p1511_p5 }
  0xad   : > { %1521 = shalt.err (!%p1518_p12)
}
  0xae   : > { %1246 = dma.hbm_to_vmem [thread:$0]  (!%p1746_p13), %s2032_s8, 16, %s348_s15, [#allocation13]  }
  0xaf   : > { %p2065_p4 = scmp.ne.s32.totalorder %s2057_s23, 0 }
  0xb0   : > { %p2066_p8 = scmp.ne.s32.totalorder (!%p2065_p4), %s2058_s24, 0 }
  0xb1   : > { %370 = sbr.rel (%p2065_p4) target bundleno = 899 (0x383), region = 56 }
  0xb8   : > { %1575 = dma.done.wait (%p2066_p8), [#allocation4], 16  }
  0xb9   : > { %1577 = vsyncadd (%p2066_p8), [#allocation4], 4294967280 }
  0xba   : > { %1579 = dma.done.wait (%p2066_p8), [#allocation7], 2048  }
  0xbb   : > { %1581 = vsyncadd (%p2066_p8), [#allocation7], 4294965248 }
  0xbc   : > { %1583 = dma.done.wait (%p2066_p8), [#allocation10], 1040  }
  0xbd   : > { %1585 = vsyncadd (%p2066_p8), [#allocation10], 4294966256 }
  0xbe   : > { %1587 = dma.done.wait (%p2066_p8), [#allocation13], 16  }
  0xbf   : > { %1589 = vsyncadd (%p2066_p8), [#allocation13], 4294967280  ;;  %v1626_v0 = vmov 0.0   ;;  %vm1627_vm0 = vmmov 0   ;;  %v1322_v1 = vld [vmem:[%s2026_s2] sm:$0xff]   ;;  %v1323_v2 = vld [vmem:[%s2026_s2 + $0x8] sm:$0xff]   ;;  %s440_s13 = scalar_lea.vmem %s2024_s0, %s1608_s12 }
  0xc0   : > { %1122 = vmatprep.subr.bf16.mxu0 %v1626_v0  ;;  %1138 = vmatprep.mubr.msk.bf16.mxu0 %vm1627_vm0, %v1626_v0  ;;  %v1324_v3 = vld [vmem:[%s2026_s2 + $0x10] sm:$0xff]   ;;  %v1330_v4 = vld [vmem:[#allocation8] sm:$0xff]   ;;  %v1325_v5 = vld [vmem:[%s2026_s2 + $0x18] sm:$0xff]   ;;  %p428_p13 = scmp.lt.s32.totalorder %s1608_s12, 1  ;;  %s425_s20 = sand.u32 1, %s1600_s10  }
  0xc1   : > { %1142 = vmatprep.subr.bf16.mxu1 %v1626_v0  ;;  %1158 = vmatprep.mubr.msk.bf16.mxu1 %vm1627_vm0, %v1626_v0  ;;  %v1331_v6 = vld [vmem:[#allocation8 + $0x8] sm:$0xff]   ;;  %v1326_v7 = vld [vmem:[%s2026_s2 + $0x20] sm:$0xff]   ;;  %v1333_v8 = vld [vmem:[#allocation8 + $0x10] sm:$0xff]   ;;  %s1046_s3 = sshll.u32 %s425_s20, 3  ;;  %s1083_s4 = sshll.u32 %s1608_s12, 7 }
  0xc2   : > { %1123 = vmatpush3.bf16.msra.mxu0 %v1322_v1  ;;  %1143 = vmatpush3.bf16.msra.mxu1 %v1330_v4  ;;  %v1327_v9 = vld [vmem:[%s2026_s2 + $0x28] sm:$0xff]   ;;  %v1335_v10 = vld [vmem:[#allocation8 + $0x18] sm:$0xff]   ;;  %v1328_v11 = vld [vmem:[%s2026_s2 + $0x30] sm:$0xff]   ;;  %s429_s23 = scalar_select %p428_p13, %s1608_s12, 1 }
  0xc3   : > { %1124 = vmatprep.subr.bf16.mxu0 %v1626_v0  ;;  %1144 = vmatprep.subr.bf16.mxu1 %v1626_v0  ;;  %v1337_v12 = vld [vmem:[#allocation8 + $0x20] sm:$0xff]   ;;  %v1329_v13 = vld [vmem:[%s2026_s2 + $0x38] sm:$0xff]   ;;  %v441_v14 = vld [vmem:[%s440_s13] sm:$0x1]  ;;  %s427_s22 = scalar_lea.vmem [#allocation14], %s1046_s3  ;;  %s1977_s11 = scalar_lea.hbm %s2033_s9, %s1083_s4 }
  0xc4   : > { %v1339_v15 = vld [vmem:[#allocation8 + $0x28] sm:$0xff]   ;;  %v442_v16 = vpack.c.bf16 %v441_v14, %v441_v14  ;;  %v1332_v17 = vld [vmem:[#allocation6] sm:$0xff]   ;;  %v1336_v19 = vld [vmem:[#allocation6 + $0x10] sm:$0xff]   ;;  %s1047_s27 = sshll.u32 %s429_s23, 2  ;;  %s897_s16 = sshll.u32 %s427_s22, 4  ;;  %s1979_s16 = int_to_ptr.vmem [resolvable:$true] %s897_s16 }
  0xc5   : > { %v1334_v18 = vld [vmem:[#allocation6 + $0x8] sm:$0xff]   ;;  %v1338_v20 = vld [vmem:[#allocation6 + $0x18] sm:$0xff]   ;;  %v1340_v21 = vld [vmem:[#allocation6 + $0x20] sm:$0xff]   ;;  %s434_s15 = scalar_lea.vmem %s2025_s1, %s1047_s27  ;;  %s883_s30 = scalar_lea.sflag [#allocation5], %s425_s20 }
  0xc6   : > { %1125 = vmatpush3.bf16.msra.mxu0 %v1323_v2  ;;  %1145 = vmatpush3.bf16.msra.mxu1 %v1331_v6  ;;  %v1341_v22 = vld [vmem:[#allocation8 + $0x30] sm:$0xff]   ;;  %v1342_v23 = vld [vmem:[#allocation6 + $0x28] sm:$0xff]   ;;  %v1343_v24 = vld [vmem:[#allocation8 + $0x38] sm:$0xff]   ;;  %s1522_s12 = scalar_lea.vmem %s1979_s16, 128  ;;  %p2067_p10 = scmp.ne.s32.totalorder %s2053_s19, 0 }
  0xc7   : > { %1126 = vmatprep.subr.bf16.mxu0 %v1626_v0  ;;  %1146 = vmatprep.subr.bf16.mxu1 %v1626_v0  ;;  %v1344_v25 = vld [vmem:[#allocation6 + $0x30] sm:$0xff]   ;;  %v1345_v26 = vld [vmem:[#allocation6 + $0x38] sm:$0xff]   ;;  %v1346_v35 = vld [vmem:[#allocation11] sm:$0xff]   ;;  %p1523_p1 = scmp.ne.s32.totalorder %s1979_s16, %s1522_s12  ;;  %s1628_s29 = smov [#allocation14]  }
  0xc8   : > { %v656_v27 = vld [vmem:[%s434_s15] sm:$0xf]  ;;  %v1347_v37 = vld [vmem:[#allocation11 + $0x8] sm:$0xff]   ;;  %v1348_v38 = vld [vmem:[#allocation11 + $0x10] sm:$0xff]   ;;  %s1526_s17 = sshll.u32 %s1628_s29, 4  ;;  %s1527_s17 = int_to_ptr.vmem [resolvable:$false] %s1526_s17 }
  0xc9   : > { %v459_v28 = vld [vmem:[#allocation3] sm:$0x1]  ;;  %v1350_v40 = vld [vmem:[#allocation11 + $0x20] sm:$0xff]   ;;  %v1351_v41 = vld [vmem:[#allocation11 + $0x28] sm:$0xff]   ;;  %p1524_p11 = pnand %p1523_p1, %p2067_p10  ;;  %s1528_s13 = scalar_lea.vmem %s1527_s17, 256 }
  0xca   : > { %1127 = vmatpush3.bf16.msra.mxu0 %v1324_v3  ;;  %1147 = vmatpush3.bf16.msra.mxu1 %v1333_v8  ;;  %v1349_v39 = vld [vmem:[#allocation11 + $0x18] sm:$0xff]   ;;  %v1352_v44 = vld [vmem:[#allocation11 + $0x30] sm:$0xff]   ;;  %v1073_v58 = vld [vmem:[#allocation12] ss:$0 sm:$0xff]  ;;  %p1529_p2 = scmp.lt.s32.totalorder %s1979_s16, %s1527_s17  ;;  %p1530_p3 = scmp.lt.s32.totalorder %s1528_s13, %s1522_s12 }
  0xcb   : > { %1128 = vmatprep.subr.bf16.mxu0 %v1626_v0  ;;  %1148 = vmatprep.subr.bf16.mxu1 %v1626_v0  ;;  %v1353_v47 = vld [vmem:[#allocation11 + $0x38] sm:$0xff]   ;;  %p1525_p0 = pneg %p1524_p11 }
  0xcc   : > { %v566_v48 = vld [vmem:[#allocation9] sm:$0x1]  ;;  %p1531_p5 = por %p1530_p3, %p1529_p2 }
  0xce   : > { %1129 = vmatpush3.bf16.msra.mxu0 %v1325_v5  ;;  %1149 = vmatpush3.bf16.msra.mxu1 %v1335_v10  ;;  %p1532_p6 = pnand %p1531_p5, %p1525_p0 }
  0xcf   : > { %1130 = vmatprep.subr.bf16.mxu0 %v1626_v0  ;;  %1150 = vmatprep.subr.bf16.mxu1 %v1626_v0 }
  0xd2   : > { %1131 = vmatpush3.bf16.msra.mxu0 %v1326_v7  ;;  %1151 = vmatpush3.bf16.msra.mxu1 %v1337_v12 }
  0xd3   : > { %1132 = vmatprep.subr.bf16.mxu0 %v1626_v0  ;;  %1152 = vmatprep.subr.bf16.mxu1 %v1626_v0 }
  0xd6   : > { %1133 = vmatpush3.bf16.msra.mxu0 %v1327_v9  ;;  %1153 = vmatpush3.bf16.msra.mxu1 %v1339_v15 }
  0xd7   : > { %1134 = vmatprep.subr.bf16.mxu0 %v1626_v0  ;;  %1154 = vmatprep.subr.bf16.mxu1 %v1626_v0 }
  0xda   : > { %1135 = vmatpush3.bf16.msra.mxu0 %v1328_v11  ;;  %1155 = vmatpush3.bf16.msra.mxu1 %v1341_v22 }
  0xdb   : > { %1136 = vmatprep.subr.bf16.mxu0 %v1626_v0  ;;  %1156 = vmatprep.subr.bf16.mxu1 %v1626_v0 }
  0xde   : > { %1137 = vmatpush3.bf16.msra.mxu0 %v1329_v13  ;;  %1157 = vmatpush3.bf16.msra.mxu1 %v1343_v24 }
  0xdf   : > { %1162 = vmatprep.subr.bf16.mxu0 %v1626_v0  ;;  %1182 = vmatprep.subr.bf16.mxu1 %v1626_v0 }
  0xe1   : > { %1139 = vmatmul.mubr.bf16.vlgmr.msra.gmra.mrb[0].mxu0 %v442_v16 }
  0xe2   : > { %1163 = vmatpush3.bf16.msra.mxu0 %v1332_v17  ;;  %1178 = vmatprep.mubr.msk.bf16.mxu0 %vm1627_vm0, %v1626_v0 }
  0xe3   : > { %1164 = vmatprep.subr.bf16.mxu0 %v1626_v0 }
  0xe6   : > { %1165 = vmatpush3.bf16.msra.mxu0 %v1334_v18 }
  0xe7   : > { %1166 = vmatprep.subr.bf16.mxu0 %v1626_v0 }
  0xea   : > { %1167 = vmatpush3.bf16.msra.mxu0 %v1336_v19 }
  0xeb   : > { %1168 = vmatprep.subr.bf16.mxu0 %v1626_v0 }
  0xee   : > { %1169 = vmatpush3.bf16.msra.mxu0 %v1338_v20 }
  0xef   : > { %1170 = vmatprep.subr.bf16.mxu0 %v1626_v0 }
  0xf2   : > { %1171 = vmatpush3.bf16.msra.mxu0 %v1340_v21 }
  0xf3   : > { %1172 = vmatprep.subr.bf16.mxu0 %v1626_v0 }
  0xf6   : > { %1173 = vmatpush3.bf16.msra.mxu0 %v1342_v23 }
  0xf7   : > { %1174 = vmatprep.subr.bf16.mxu0 %v1626_v0 }
  0xfa   : > { %1175 = vmatpush3.bf16.msra.mxu0 %v1344_v25 }
  0xfb   : > { %1176 = vmatprep.subr.bf16.mxu0 %v1626_v0 }
  0xfe   : > { %1177 = vmatpush3.bf16.msra.mxu0 %v1345_v26 }
 0x101   : > { %1179 = vmatmul.mubr.bf16.vlgmr.msra.gmra.mrb[4].mxu0 %v656_v27 }
 0x1b4   : > { %v542_v29 = vpop.f32.mrb[0].mxu0 }
 0x1b5   : > { %v543_v30 = vadd.f32 %v542_v29, %v459_v28  ;;  %v1140_v31 = vpop.f32.mrb[1].mxu0 }
 0x1b6   : > { %v545_v32 = vpop.f32.mrb[2].mxu0 }
 0x1b7   : > { %v548_v33 = vmax.f32 %v543_v30, 0.0  ;;  %v1141_v34 = vpop.f32.mrb[3].mxu0 }
 0x1b9   : > { %v549_v36 = vpack.c.bf16 %v548_v33, %v548_v33 }
 0x1bb   : > { %1159 = vmatmul.mubr.bf16.vlgmr.msra.gmra.mrb[0].mxu1 %v549_v36 }
 0x1bc   : > { %1183 = vmatpush3.bf16.msra.mxu1 %v1346_v35  ;;  %1198 = vmatprep.mubr.msk.bf16.mxu1 %vm1627_vm0, %v1626_v0 }
 0x1bd   : > { %1184 = vmatprep.subr.bf16.mxu1 %v1626_v0 }
 0x1c0   : > { %1185 = vmatpush3.bf16.msra.mxu1 %v1347_v37 }
 0x1c1   : > { %1186 = vmatprep.subr.bf16.mxu1 %v1626_v0 }
 0x1c4   : > { %1187 = vmatpush3.bf16.msra.mxu1 %v1348_v38 }
 0x1c5   : > { %1188 = vmatprep.subr.bf16.mxu1 %v1626_v0 }
 0x1c8   : > { %1189 = vmatpush3.bf16.msra.mxu1 %v1349_v39 }
 0x1c9   : > { %1190 = vmatprep.subr.bf16.mxu1 %v1626_v0 }
 0x1cc   : > { %1191 = vmatpush3.bf16.msra.mxu1 %v1350_v40 }
 0x1cd   : > { %1192 = vmatprep.subr.bf16.mxu1 %v1626_v0 }
 0x1d0   : > { %1193 = vmatpush3.bf16.msra.mxu1 %v1351_v41 }
 0x1d1   : > { %1194 = vmatprep.subr.bf16.mxu1 %v1626_v0 }
 0x1d4   : > { %v762_v42 = vpop.f32.mrb[4].mxu0  ;;  %1195 = vmatpush3.bf16.msra.mxu1 %v1352_v44 }
 0x1d5   : > { %v1180_v43 = vpop.f32.mrb[5].mxu0  ;;  %1196 = vmatprep.subr.bf16.mxu1 %v1626_v0 }
 0x1d6   : > { %v765_v45 = vpop.f32.mrb[6].mxu0 }
 0x1d7   : > { %v1181_v46 = vpop.f32.mrb[7].mxu0 }
 0x1d8   : > { %1197 = vmatpush3.bf16.msra.mxu1 %v1353_v47 }
 0x28e   : > { %v649_v49 = vpop.f32.mrb[0].mxu1 }
 0x28f   : > { %v650_v50 = vadd.f32 %v649_v49, %v566_v48  ;;  %v1160_v51 = vpop.f32.mrb[1].mxu1 }
 0x290   : > { %v652_v52 = vpop.f32.mrb[2].mxu1 }
 0x291   : > { %655 = vst [vmem:[#allocation2] sm:$0x1] %v650_v50  ;;  %v1161_v53 = vpop.f32.mrb[3].mxu1 }
 0x298   : > { %v1064_v54 = vld [vmem:[#allocation2] ss:$0 sm:$0xff] }
 0x299   : > { %v763_v55 = vadd.f32 %v1064_v54, %v762_v42 }
 0x29b   : > { %v768_v56 = vmax.f32 %v763_v55, 0.0 }
 0x29d   : > { %v769_v57 = vpack.c.bf16 %v768_v56, %v768_v56 }
 0x29f   : > { %1199 = vmatmul.mubr.bf16.vlgmr.msra.gmra.mrb[4].mxu1 %v769_v57 }
 0x372   : > { %v875_v59 = vpop.f32.mrb[4].mxu1 }
 0x373   : > { %v876_v60 = vadd.f32 %v1073_v58, %v875_v59  ;;  %v1200_v61 = vpop.f32.mrb[5].mxu1 }
 0x374   : > { %v878_v62 = vpop.f32.mrb[6].mxu1 }
 0x375   : > { %881 = vst [vmem:[%s427_s22] sm:$0xff] %v876_v60  ;;  %v1201_v63 = vpop.f32.mrb[7].mxu1 }
 0x376   : > { %1535 = shalt.err (!%p1532_p6)
}
 0x377   : > { %s1536_s21 = scalar_lea.hbm %s1977_s11, 128  ;;  %s1540_s27 = scalar_lea.hbm %s2033_s9, 256 }
 0x378   : > { %p1537_p7 = scmp.ne.s32.totalorder %s1977_s11, %s1536_s21  ;;  %p1541_p4 = scmp.lt.u32.totalorder %s1977_s11, %s2033_s9 }
 0x379   : > { %p1542_p8 = scmp.lt.u32.totalorder %s1540_s27, %s1536_s21  ;;  %p1544_p1 = scmp.lt.u32.totalorder %s1536_s21, %s1977_s11 }
 0x37a   : > { %p1538_p9 = pnand %p1537_p7, %p2067_p10 }
 0x37b   : > { %p1543_p13 = por %p1542_p8, %p1541_p4 }
 0x37c   : > { %p1539_p12 = pneg %p1538_p9 }
 0x37d   : > { %p1545_p11 = por %p1544_p1, %p1543_p13 }
 0x37f   : > { %p1546_p0 = pnand %p1545_p11, %p1539_p12 }
 0x381   : > { %1549 = shalt.err (!%p1546_p0)
}
 0x382   : > { %1226 = dma.vmem_to_hbm [thread:$0]  (%p2067_p10), %s1979_s16, 128, %s1977_s11, %s883_s30  }
 0x383 PF: > { %s2068_s15 = sld [smem:[#allocation20_spill]]  ;;  %s2069_s20 = sld [smem:[#allocation24_spill]] }
 0x384   : > { %p1263_p2 = scmp.ge.s32.totalorder %s1616_s14, 2 }
 0x389   : > { %s909_s3 = sand.u32 1, %s2068_s15   ;;  %p2070_p3 = scmp.ne.s32.totalorder %s2069_s20, 0 }
 0x38a   : > { %s910_s4 = scalar_lea.sflag [#allocation5], %s909_s3 }
 0x38b   : > { %p1248_p5 = pnand %p1263_p2, %p2070_p3 }
 0x38d   : > { %1591 = dma.done.wait (!%p1248_p5), %s910_s4, 128  }
 0x38e   : > { %1593 = vsyncadd (!%p1248_p5), %s910_s4, 4294967168  ;;  %s26_s14 = sadd.s32 1, %s1616_s14   ;;  %s2071_s22 = sld [smem:[#allocation21_spill]] }
 0x38f   : > { %p23_p6 = scmp.ge.s32.totalorder %s26_s14, 4   ;;  %s2072_s11 = sld [smem:[#allocation25_spill]] }
 0x390   : > { %s2073_s12 = sld [smem:[#allocation22_spill]]  ;;  %s2074_s13 = sld [smem:[#allocation23_spill]] }
 0x391   : > { %s2075_s30 = smov %s1600_s10  ;;  %25 = sbr.rel (!%p23_p6) target bundleno = 11 (0xb), region = 121 }
 0x394   : > { %s2076_s10 = smov %s2071_s22 }
 0x398   :  { %915 = vsyncpa [#allocation4], 1 }
 0x399   :  { %917 = vsyncpa [#allocation4 + $0x1], 1 }
 0x39a   :  { %918 = vsyncpa [#allocation7], 1 }
 0x39b   :  { %919 = vsyncpa [#allocation10], 1 }
 0x39c   :  { %920 = vsyncpa [#allocation13], 1 }
 0x39d   :  { %921 = vsyncpa [#allocation5], 1 }
 0x39e   :  { %923 = vsyncpa [#allocation5 + $0x1], 1 }

</bundles_post_ra>
